<compile_context>
chip_gen: v7x
topology: tpu7x:2x2x1
jax: 0.10.0
libtpu: 0.0.40
codegen_flags: <defaults>
</compile_context>

<pallas_src>
import functools

import jax
import jax.numpy as jnp
from jax.experimental import pallas as pl
from jax.experimental.pallas import tpu as pltpu


def _round_up(x, m):
    return (x + m - 1) // m * m


def _vmem_limit_bytes():
    # Raise the scoped VMEM limit (defaults: 16 MiB v5e / 32 MiB v6e,v7x)
    # so the resident v2 + big batch tiles fit; leave headroom for scratch.
    try:
        cap = pltpu.get_tpu_info().vmem_capacity_bytes
        return int(min(cap * 3 // 4, 100 * 1024 * 1024))
    except Exception:
        return 64 * 1024 * 1024


def _infonce_kernel(v1_ref, v2t_ref, nidx_ref, out_ref, *,
                    temperature, b_cos, num_neg, tile_b, valid_b):
    i = pl.program_id(0)

    # v1 tile: normalize in f32 (done once per row over the whole grid),
    # then cast to bf16 for the MXU.
    v1 = v1_ref[...].astype(jnp.float32)                    # (TB, Dp)
    if b_cos:
        sq = jnp.sum(v1 * v1, axis=-1, keepdims=True)
        # x * rsqrt(max(sq, 1e-24)) == x / max(||x||, 1e-12)  (torch F.normalize)
        v1 = v1 * jax.lax.rsqrt(jnp.maximum(sq, 1e-24))
    v1b = v1.astype(jnp.bfloat16)

    # v2 is already normalized / bf16 / transposed in the wrapper: (Dp, Bp).
    v2t = v2t_ref[...]

    # MXU similarity tile: S[r, j] = <v1_tile[r], v2[j]>  -> (TB, Bp), f32 acc.
    s = jax.lax.dot_general(
        v1b, v2t, (((1,), (0,)), ((), ())),
        preferred_element_type=jnp.float32)

    tb, bp = s.shape
    inv_t = 1.0 / temperature

    col = jax.lax.broadcasted_iota(jnp.int32, (tb, bp), 1)                # (TB, Bp)
    gid = jax.lax.broadcasted_iota(jnp.int32, (tb, 1), 0) + i * tile_b    # (TB, 1)

    # Positive score = diagonal element of the global similarity matrix.
    pos_s = jnp.sum(jnp.where(col == gid, s, 0.0), axis=-1, keepdims=True)  # (TB,1)
    pos_st = pos_s * inv_t
    pos_e = jnp.exp(pos_st)

    # Negatives: select score per (row, negative) with an iota==index mask
    # and exp only those TB*N values (no dense exp over (TB, Bp)).
    nidx = nidx_ref[...]                                                  # (TB, N)
    neg_e = jnp.zeros((tb, 1), jnp.float32)
    for n in range(num_neg):                                              # N small & static
        sel = col == nidx[:, n:n + 1]
        neg_s = jnp.sum(jnp.where(sel, s, 0.0), axis=-1, keepdims=True)
        neg_e = neg_e + jnp.exp(neg_s * inv_t)
    neg_mean = neg_e * (1.0 / num_neg)

    # -log(pos_e / (pos_e + neg_mean + eps)) == log(pos_e + neg_mean + eps) - pos_s/T
    cl = jnp.log(pos_e + neg_mean + 1e-6) - pos_st                        # (TB, 1)

    valid = (gid < valid_b).astype(jnp.float32)                           # mask padded rows
    tile_sum = jnp.sum(cl * valid)

    out_ref[...] = jnp.broadcast_to(tile_sum, (1, 1, 1))


def infonce_pallas(view1, view2, neg_idx, temperature=0.2, b_cos=True,
                   max_tile_b=256):
    """InfoNCE loss. view1, view2: (B, D); neg_idx: (B, NUM_NEG) ints in [0, B)."""
    B, D = view1.shape
    N = neg_idx.shape[1]

    # MXU / vreg friendly padding.
    D_pad = _round_up(D, 128)
    TB = min(max_tile_b, _round_up(B, 8))     # batch tile, multiple of 8
    B_pad = _round_up(B, TB)
    n_tiles = B_pad // TB

    # v1: f32, pad only (per-tile normalization stays inside the kernel).
    v1p = view1.astype(jnp.float32)
    if (B_pad, D_pad) != (B, D):
        v1p = jnp.pad(v1p, ((0, B_pad - B), (0, D_pad - D)))

    # v2: normalize + bf16 cast + pad + transpose ONCE (fused XLA pass),
    # laid out contraction-major (D_pad, B_pad) for the in-kernel dot.
    v2 = view2.astype(jnp.float32)
    if b_cos:
        sq = jnp.sum(v2 * v2, axis=-1, keepdims=True)
        v2 = v2 * jax.lax.rsqrt(jnp.maximum(sq, 1e-24))
    v2 = v2.astype(jnp.bfloat16)
    if (B_pad, D_pad) != (B, D):
        v2 = jnp.pad(v2, ((0, B_pad - B), (0, D_pad - D)))
    v2t = v2.T                                               # (D_pad, B_pad)

    # neg_idx: expected in [0, B); padded rows are masked out in the kernel.
    nidx_p = neg_idx.astype(jnp.int32)
    if B_pad != B:
        nidx_p = jnp.pad(nidx_p, ((0, B_pad - B), (0, 0)))

    kernel = functools.partial(
        _infonce_kernel,
        temperature=float(temperature), b_cos=bool(b_cos),
        num_neg=int(N), tile_b=int(TB), valid_b=int(B))

    out = pl.pallas_call(
        kernel,
        out_shape=jax.ShapeDtypeStruct((n_tiles, 1, 1), jnp.float32),
        grid_spec=pl.GridSpec(
            grid=(n_tiles,),
            in_specs=[
                pl.BlockSpec((TB, D_pad), lambda i: (i, 0)),       # v1 batch tile
                pl.BlockSpec((D_pad, B_pad), lambda i: (0, 0)),    # v2^T resident
                pl.BlockSpec((TB, N), lambda i: (i, 0)),           # neg_idx tile
            ],
            # One private (1,1,1) partial-sum block per tile -> no revisited
            # accumulator, grid axis can be truly parallel (v7x megacore).
            out_specs=pl.BlockSpec((1, 1, 1), lambda i: (i, 0, 0)),
        ),
        compiler_params=pltpu.CompilerParams(
            dimension_semantics=("parallel",),
            vmem_limit_bytes=_vmem_limit_bytes()),
    )(v1p, v2t, nidx_p)

    return jnp.sum(out) / B


def infonce_reference(view1, view2, neg_idx, temperature=0.2, b_cos=True):
    """Pure-JAX f32 reference mirroring the PyTorch module."""
    if b_cos:
        def norm(x):
            return x / jnp.maximum(
                jnp.sqrt(jnp.sum(x * x, axis=1, keepdims=True)), 1e-12)
        view1, view2 = norm(view1), norm(view2)
    pos = jnp.exp(jnp.sum(view1 * view2, axis=-1) / temperature)
    neg_v2 = view2[neg_idx]                                        # (B, N, D)
    neg = jnp.exp(jnp.sum(view1[:, None, :] * neg_v2, axis=-1) / temperature)
    neg_mean = jnp.mean(neg, axis=1)
    cl = -jnp.log(pos / (pos + neg_mean + 1e-6))
    return jnp.mean(cl)


if __name__ == "__main__":
    TEMP = 0.2
    key = jax.random.PRNGKey(0)

    # Case 1: small, single tile.
    B, D, NUM_NEG = 8, 32, 5
    k1, k2, k3, k4, k5, k6 = jax.random.split(key, 6)
    view1 = jax.random.normal(k1, (B, D), dtype=jnp.float32)
    view2 = jax.random.normal(k2, (B, D), dtype=jnp.float32)
    # TODO(synk): torch.randint in-forward negative sampling is replaced by
    # deterministic host-side jax.random indices passed into the kernel.
    neg_idx = jax.random.randint(k3, (B, NUM_NEG), 0, B, dtype=jnp.int32)

    loss = infonce_pallas(view1, view2, neg_idx, temperature=TEMP, b_cos=True)
    loss = jax.block_until_ready(loss)
    ref = infonce_reference(view1, view2, neg_idx, temperature=TEMP, b_cos=True)
    # bf16 MXU operands -> relaxed tolerance vs the f32 reference.
    assert jnp.allclose(loss, ref, atol=3e-2, rtol=3e-2), (loss, ref)

    # Case 2: multi-tile + padded rows (B=20, TB=8 -> 3 tiles, 4 pad rows).
    B2, D2 = 20, 32
    view1b = jax.random.normal(k4, (B2, D2), dtype=jnp.float32)
    view2b = jax.random.normal(k5, (B2, D2), dtype=jnp.float32)
    neg_idx_b = jax.random.randint(k6, (B2, NUM_NEG), 0, B2, dtype=jnp.int32)

    loss2 = infonce_pallas(view1b, view2b, neg_idx_b, temperature=TEMP,
                           b_cos=True, max_tile_b=8)
    loss2 = jax.block_until_ready(loss2)
    ref2 = infonce_reference(view1b, view2b, neg_idx_b, temperature=TEMP,
                             b_cos=True)
    assert jnp.allclose(loss2, ref2, atol=3e-2, rtol=3e-2), (loss2, ref2)

    print("KERNEL_OK")
</pallas_src>

<mosaic_0001>
module attributes {stable_mosaic.version = 11 : i64} {
  func.func @_infonce_kernel(%arg0: i32, %arg1: memref<8x128xf32, #tpu.memory_space<vmem>>, %arg2: memref<128x8xbf16, #tpu.memory_space<vmem>>, %arg3: memref<8x5xi32, #tpu.memory_space<vmem>>, %arg4: memref<1x1x1xf32, #tpu.memory_space<vmem>>) attributes {dimension_semantics = [#tpu.dimension_semantics<parallel>], iteration_bounds = array<i64: 1>, scalar_prefetch = 0 : i64, scratch_operands = 0 : i64, tpu.core_type = #tpu.core_type<tc>, window_params = [{transform_indices = @transform_0, window_bounds = array<i64: 8, 128>}, {pipeline_mode = #tpu.pipeline_mode<synchronous>, transform_indices = @transform_1, window_bounds = array<i64: 128, 8>}, {transform_indices = @transform_2, window_bounds = array<i64: 8, 5>}, {transform_indices = @transform_3, window_bounds = array<i64: 1, 1, 1>}]} {
    %c0 = arith.constant 0 : index
    %c0_0 = arith.constant 0 : index
    %0 = vector.load %arg1[%c0, %c0_0] : memref<8x128xf32, #tpu.memory_space<vmem>>, vector<8x128xf32>
    %1 = arith.mulf %0, %0 : vector<8x128xf32>
    %cst = arith.constant dense<0.000000e+00> : vector<8xf32>
    %2 = vector.multi_reduction <add>, %1, %cst [1] : vector<8x128xf32> to vector<8xf32>
    %3 = vector.shape_cast %2 : vector<8xf32> to vector<8x1xf32>
    %cst_1 = arith.constant 1.000000e-24 : f32
    %4 = vector.broadcast %cst_1 : f32 to vector<8x1xf32>
    %5 = arith.maximumf %3, %4 : vector<8x1xf32>
    %6 = math.rsqrt %5 : vector<8x1xf32>
    %7 = vector.broadcast %6 : vector<8x1xf32> to vector<8x128xf32>
    %8 = arith.mulf %0, %7 : vector<8x128xf32>
    %9 = arith.truncf %8 : vector<8x128xf32> to vector<8x128xbf16>
    %c0_2 = arith.constant 0 : index
    %c0_3 = arith.constant 0 : index
    %10 = vector.load %arg2[%c0_2, %c0_3] : memref<128x8xbf16, #tpu.memory_space<vmem>>, vector<128x8xbf16>
    %cst_4 = arith.constant dense<0.000000e+00> : vector<8x8xf32>
    %11 = tpu.matmul %9, %10, %cst_4 {dimension_numbers = #tpu.dot_dimension_numbers<[1], [0], [0], [1], [0, 0, 1, 1], [], []>} : vector<8x128xbf16>, vector<128x8xbf16>, vector<8x8xf32> -> vector<8x8xf32>
    %12 = tpu.iota {dimensions = array<i32: 1>} : vector<8x8xi32>
    %13 = tpu.iota {dimensions = array<i32: 0>} : vector<8x1xi32>
    %c8_i32 = arith.constant 8 : i32
    %14 = arith.muli %arg0, %c8_i32 : i32
    %15 = vector.broadcast %14 : i32 to vector<8x1xi32>
    %16 = arith.addi %13, %15 : vector<8x1xi32>
    %17 = vector.broadcast %16 : vector<8x1xi32> to vector<8x8xi32>
    %18 = arith.cmpi eq, %12, %17 : vector<8x8xi32>
    %cst_5 = arith.constant 0.000000e+00 : f32
    %19 = vector.broadcast %cst_5 : f32 to vector<8x8xf32>
    %20 = arith.select %18, %11, %19 : vector<8x8xi1>, vector<8x8xf32>
    %cst_6 = arith.constant dense<0.000000e+00> : vector<8xf32>
    %21 = vector.multi_reduction <add>, %20, %cst_6 [1] : vector<8x8xf32> to vector<8xf32>
    %22 = vector.shape_cast %21 : vector<8xf32> to vector<8x1xf32>
    %cst_7 = arith.constant 5.000000e+00 : f32
    %23 = vector.broadcast %cst_7 : f32 to vector<8x1xf32>
    %24 = arith.mulf %22, %23 : vector<8x1xf32>
    %25 = math.exp %24 : vector<8x1xf32>
    %c0_8 = arith.constant 0 : index
    %c0_9 = arith.constant 0 : index
    %26 = vector.load %arg3[%c0_8, %c0_9] : memref<8x5xi32, #tpu.memory_space<vmem>>, vector<8x5xi32>
    %cst_10 = arith.constant 0.000000e+00 : f32
    %27 = vector.broadcast %cst_10 : f32 to vector<8x1xf32>
    %28 = vector.extract_strided_slice %26 {offsets = [0, 0], sizes = [8, 1], strides = [1, 1]} : vector<8x5xi32> to vector<8x1xi32>
    %29 = vector.broadcast %28 : vector<8x1xi32> to vector<8x8xi32>
    %30 = arith.cmpi eq, %12, %29 : vector<8x8xi32>
    %cst_11 = arith.constant 0.000000e+00 : f32
    %31 = vector.broadcast %cst_11 : f32 to vector<8x8xf32>
    %32 = arith.select %30, %11, %31 : vector<8x8xi1>, vector<8x8xf32>
    %cst_12 = arith.constant dense<0.000000e+00> : vector<8xf32>
    %33 = vector.multi_reduction <add>, %32, %cst_12 [1] : vector<8x8xf32> to vector<8xf32>
    %34 = vector.shape_cast %33 : vector<8xf32> to vector<8x1xf32>
    %cst_13 = arith.constant 5.000000e+00 : f32
    %35 = vector.broadcast %cst_13 : f32 to vector<8x1xf32>
    %36 = arith.mulf %34, %35 : vector<8x1xf32>
    %37 = math.exp %36 : vector<8x1xf32>
    %38 = arith.addf %27, %37 : vector<8x1xf32>
    %39 = vector.extract_strided_slice %26 {offsets = [0, 1], sizes = [8, 1], strides = [1, 1]} : vector<8x5xi32> to vector<8x1xi32>
    %40 = vector.broadcast %39 : vector<8x1xi32> to vector<8x8xi32>
    %41 = arith.cmpi eq, %12, %40 : vector<8x8xi32>
    %cst_14 = arith.constant 0.000000e+00 : f32
    %42 = vector.broadcast %cst_14 : f32 to vector<8x8xf32>
    %43 = arith.select %41, %11, %42 : vector<8x8xi1>, vector<8x8xf32>
    %cst_15 = arith.constant dense<0.000000e+00> : vector<8xf32>
    %44 = vector.multi_reduction <add>, %43, %cst_15 [1] : vector<8x8xf32> to vector<8xf32>
    %45 = vector.shape_cast %44 : vector<8xf32> to vector<8x1xf32>
    %cst_16 = arith.constant 5.000000e+00 : f32
    %46 = vector.broadcast %cst_16 : f32 to vector<8x1xf32>
    %47 = arith.mulf %45, %46 : vector<8x1xf32>
    %48 = math.exp %47 : vector<8x1xf32>
    %49 = arith.addf %38, %48 : vector<8x1xf32>
    %50 = vector.extract_strided_slice %26 {offsets = [0, 2], sizes = [8, 1], strides = [1, 1]} : vector<8x5xi32> to vector<8x1xi32>
    %51 = vector.broadcast %50 : vector<8x1xi32> to vector<8x8xi32>
    %52 = arith.cmpi eq, %12, %51 : vector<8x8xi32>
    %cst_17 = arith.constant 0.000000e+00 : f32
    %53 = vector.broadcast %cst_17 : f32 to vector<8x8xf32>
    %54 = arith.select %52, %11, %53 : vector<8x8xi1>, vector<8x8xf32>
    %cst_18 = arith.constant dense<0.000000e+00> : vector<8xf32>
    %55 = vector.multi_reduction <add>, %54, %cst_18 [1] : vector<8x8xf32> to vector<8xf32>
    %56 = vector.shape_cast %55 : vector<8xf32> to vector<8x1xf32>
    %cst_19 = arith.constant 5.000000e+00 : f32
    %57 = vector.broadcast %cst_19 : f32 to vector<8x1xf32>
    %58 = arith.mulf %56, %57 : vector<8x1xf32>
    %59 = math.exp %58 : vector<8x1xf32>
    %60 = arith.addf %49, %59 : vector<8x1xf32>
    %61 = vector.extract_strided_slice %26 {offsets = [0, 3], sizes = [8, 1], strides = [1, 1]} : vector<8x5xi32> to vector<8x1xi32>
    %62 = vector.broadcast %61 : vector<8x1xi32> to vector<8x8xi32>
    %63 = arith.cmpi eq, %12, %62 : vector<8x8xi32>
    %cst_20 = arith.constant 0.000000e+00 : f32
    %64 = vector.broadcast %cst_20 : f32 to vector<8x8xf32>
    %65 = arith.select %63, %11, %64 : vector<8x8xi1>, vector<8x8xf32>
    %cst_21 = arith.constant dense<0.000000e+00> : vector<8xf32>
    %66 = vector.multi_reduction <add>, %65, %cst_21 [1] : vector<8x8xf32> to vector<8xf32>
    %67 = vector.shape_cast %66 : vector<8xf32> to vector<8x1xf32>
    %cst_22 = arith.constant 5.000000e+00 : f32
    %68 = vector.broadcast %cst_22 : f32 to vector<8x1xf32>
    %69 = arith.mulf %67, %68 : vector<8x1xf32>
    %70 = math.exp %69 : vector<8x1xf32>
    %71 = arith.addf %60, %70 : vector<8x1xf32>
    %72 = vector.extract_strided_slice %26 {offsets = [0, 4], sizes = [8, 1], strides = [1, 1]} : vector<8x5xi32> to vector<8x1xi32>
    %73 = vector.broadcast %72 : vector<8x1xi32> to vector<8x8xi32>
    %74 = arith.cmpi eq, %12, %73 : vector<8x8xi32>
    %cst_23 = arith.constant 0.000000e+00 : f32
    %75 = vector.broadcast %cst_23 : f32 to vector<8x8xf32>
    %76 = arith.select %74, %11, %75 : vector<8x8xi1>, vector<8x8xf32>
    %cst_24 = arith.constant dense<0.000000e+00> : vector<8xf32>
    %77 = vector.multi_reduction <add>, %76, %cst_24 [1] : vector<8x8xf32> to vector<8xf32>
    %78 = vector.shape_cast %77 : vector<8xf32> to vector<8x1xf32>
    %cst_25 = arith.constant 5.000000e+00 : f32
    %79 = vector.broadcast %cst_25 : f32 to vector<8x1xf32>
    %80 = arith.mulf %78, %79 : vector<8x1xf32>
    %81 = math.exp %80 : vector<8x1xf32>
    %82 = arith.addf %71, %81 : vector<8x1xf32>
    %cst_26 = arith.constant 2.000000e-01 : f32
    %83 = vector.broadcast %cst_26 : f32 to vector<8x1xf32>
    %84 = arith.mulf %82, %83 : vector<8x1xf32>
    %85 = arith.addf %25, %84 : vector<8x1xf32>
    %cst_27 = arith.constant 9.99999997E-7 : f32
    %86 = vector.broadcast %cst_27 : f32 to vector<8x1xf32>
    %87 = arith.addf %85, %86 : vector<8x1xf32>
    %88 = math.log %87 : vector<8x1xf32>
    %89 = arith.subf %88, %24 : vector<8x1xf32>
    %c8_i32_28 = arith.constant 8 : i32
    %90 = vector.broadcast %c8_i32_28 : i32 to vector<8x1xi32>
    %91 = arith.cmpi slt, %16, %90 : vector<8x1xi32>
    %92 = arith.extui %91 : vector<8x1xi1> to vector<8x1xi32>
    %93 = arith.sitofp %92 : vector<8x1xi32> to vector<8x1xf32>
    %94 = arith.mulf %89, %93 : vector<8x1xf32>
    %95 = vector.shape_cast %94 : vector<8x1xf32> to vector<1x8x1xf32>
    %cst_29 = arith.constant dense<0.000000e+00> : vector<1xf32>
    %96 = vector.multi_reduction <add>, %95, %cst_29 [1, 2] : vector<1x8x1xf32> to vector<1xf32>
    %97 = vector.shape_cast %96 : vector<1xf32> to vector<1x1x1xf32>
    %98 = vector.extract %97[0, 0, 0] : f32 from vector<1x1x1xf32>
    %99 = vector.broadcast %98 : f32 to vector<1x1x1xf32>
    %c0_30 = arith.constant 0 : index
    %c0_31 = arith.constant 0 : index
    %c0_32 = arith.constant 0 : index
    %100 = vector.load %arg4[%c0_30, %c0_31, %c0_32] : memref<1x1x1xf32, #tpu.memory_space<vmem>>, vector<1x1x1xf32>
    tpu.vector_store %arg4[%c0_30, %c0_31, %c0_32], %99 {strides = array<i32>} : memref<1x1x1xf32, #tpu.memory_space<vmem>>, vector<1x1x1xf32>,
    return
  }
  func.func @transform_0(%arg0: i32) -> (i32, i32) {
    %c0_i32 = arith.constant 0 : i32
    %c0_i32_0 = arith.constant 0 : i32
    return %arg0, %c0_i32 : i32, i32
  }
  func.func @transform_1(%arg0: i32) -> (i32, i32) {
    %c0_i32 = arith.constant 0 : i32
    %c0_i32_0 = arith.constant 0 : i32
    %c0_i32_1 = arith.constant 0 : i32
    return %c0_i32, %c0_i32_0 : i32, i32
  }
  func.func @transform_2(%arg0: i32) -> (i32, i32) {
    %c0_i32 = arith.constant 0 : i32
    %c0_i32_0 = arith.constant 0 : i32
    return %arg0, %c0_i32 : i32, i32
  }
  func.func @transform_3(%arg0: i32) -> (i32, i32, i32) {
    %c0_i32 = arith.constant 0 : i32
    %c0_i32_0 = arith.constant 0 : i32
    %c0_i32_1 = arith.constant 0 : i32
    return %arg0, %c0_i32, %c0_i32_0 : i32, i32, i32
  }
}

</mosaic_0001>

<bundles_post_ra>
// kernel: tpu_custom_call.1
= control target key start
LH: loop header
LB: loop body
LE: loop exit
PB: predicated region body
PF: predicated region fallthrough
CT: control target
= control target key end

     0   :  { %8 = vsyncpa [#allocation3], 0  ;;  %s545_s0 = inlined_call_operand.hbm [shape: f32[8,128], index: 0, kind: input, shape index: {}]   ;;  %s546_s1 = inlined_call_operand.hbm [shape: bf16[128,8], index: 1, kind: input, shape index: {}]   ;;  %s547_s2 = inlined_call_operand.hbm [shape: s32[8,5], index: 2, kind: input, shape index: {}]   ;;  %s548_s3 = inlined_call_operand.hbm [shape: f32[1,1,1], index: 3, kind: output, shape index: {}]  }
   0x1   :  { %9 = vsyncpa [#allocation6], 0 }
   0x2   :  { %10 = vsyncpa [#allocation4], 0  ;;  %s458_s12 = smov [#allocation5]   ;;  %s364_s16 = scalar_lea.hbm %s546_s1, 1024 }
   0x3   :  { %s26_s13 = sshll.u32 %s458_s12, 4  ;;  %p365_p0 = scmp.ne.s32.totalorder %s546_s1, %s364_s16  ;;  %s27_s13 = int_to_ptr.vmem [resolvable:$true] %s26_s13 }
   0x4   :  { %p368_p1 = scmp.lt.u32.totalorder %s364_s16, %s546_s1 }
   0x6   :  { %p370_p2 = pnand %p368_p1, %p365_p0 }
   0x8   :  { %373 = shalt.err (!%p370_p2)
}
   0x9   :  { %s374_s21 = scalar_lea.vmem %s27_s13, 1024  ;;  %p379_p4 = scmp.lt.s32.totalorder %s27_s13, %s27_s13 }
   0xa   :  { %p375_p3 = scmp.ne.s32.totalorder %s27_s13, %s374_s21  ;;  %p380_p5 = scmp.lt.s32.totalorder %s374_s21, %s374_s21 }
   0xc   :  { %p381_p6 = por %p380_p5, %p379_p4 }
   0xe   :  { %p382_p7 = pnand %p381_p6, %p375_p3 }
  0x10   :  { %385 = shalt.err (!%p382_p7)
}
  0x11   :  { %s459_s22 = smov 64   ;;  %s460_s23 = smov 4  }
  0x12   :  { %32 = dma.hbm_to_vmem [thread:$0]  %s546_s1, 1024, %s27_s13, [#allocation6], %s459_s22, %s459_s22, %s460_s23  }
  0x13   :  { %s461_s26 = smov [#allocation2]   ;;  %s462_s28 = smov [#allocation7]  }
  0x14   :  { %s17_s27 = sshll.u32 %s461_s26, 4  ;;  %s39_s29 = sshll.u32 %s462_s28, 4  ;;  %s18_s27 = int_to_ptr.vmem [resolvable:$true] %s17_s27  ;;  %s40_s29 = int_to_ptr.vmem [resolvable:$true] %s39_s29 }
  0x15   :  { %s386_s5 = scalar_lea.hbm %s545_s0, 128 }
  0x16   :  { %p387_p8 = scmp.ne.s32.totalorder %s545_s0, %s386_s5  ;;  %p390_p9 = scmp.lt.u32.totalorder %s386_s5, %s545_s0 }
  0x18   :  { %p392_p10 = pnand %p390_p9, %p387_p8 }
  0x1a   :  { %395 = shalt.err (!%p392_p10)
}
  0x1b   :  { %s396_s1 = scalar_lea.vmem %s18_s27, 128  ;;  %p401_p12 = scmp.lt.s32.totalorder %s18_s27, %s18_s27 }
  0x1c   :  { %p397_p11 = scmp.ne.s32.totalorder %s18_s27, %s396_s1  ;;  %p402_p13 = scmp.lt.s32.totalorder %s396_s1, %s396_s1 }
  0x1e   :  { %p403_p0 = por %p402_p13, %p401_p12 }
  0x20   :  { %p404_p1 = pnand %p403_p0, %p397_p11 }
  0x22   :  { %407 = shalt.err (!%p404_p1)
}
  0x23   :  { %20 = dma.hbm_to_vmem [thread:$0]  %s545_s0, 128, %s18_s27, [#allocation3]  }
  0x24   :  { %s408_s14 = scalar_lea.hbm %s547_s2, 128 }
  0x25   :  { %p409_p2 = scmp.ne.s32.totalorder %s547_s2, %s408_s14  ;;  %p412_p3 = scmp.lt.u32.totalorder %s408_s14, %s547_s2 }
  0x27   :  { %p414_p4 = pnand %p412_p3, %p409_p2 }
  0x29   :  { %417 = shalt.err (!%p414_p4)
}
  0x2a   :  { %s418_s19 = scalar_lea.vmem %s40_s29, 128  ;;  %p423_p6 = scmp.lt.s32.totalorder %s40_s29, %s40_s29 }
  0x2b   :  { %p419_p5 = scmp.ne.s32.totalorder %s40_s29, %s418_s19  ;;  %p424_p7 = scmp.lt.s32.totalorder %s418_s19, %s418_s19 }
  0x2d   :  { %p425_p8 = por %p424_p7, %p423_p6 }
  0x2f   :  { %p426_p9 = pnand %p425_p8, %p419_p5 }
  0x31   :  { %429 = shalt.err (!%p426_p9)
}
  0x32   :  { %42 = dma.hbm_to_vmem [thread:$0]  %s547_s2, 128, %s40_s29, [#allocation6]  }
  0x33   :  { %452 = dma.done.wait [#allocation3], 128  }
  0x34   :  { %453 = vsyncadd [#allocation3], 4294967168 }
  0x35   :  { %454 = dma.done.wait [#allocation6], 1152  }
  0x36   :  { %455 = vsyncadd [#allocation6], 4294966144  ;;  %v463_v0 = vmov 0.0   ;;  %v53_v1 = vld [vmem:[#allocation2] sm:$0xff]  ;;  %v340_v3 = vld [vmem:[#allocation5] sm:$0xff]   ;;  %vm464_vm0 = vmmov 0   ;;  %v165_v23 = vlaneseq }
  0x37   :  { %299 = vmatprep.subr.bf16.mxu0 %v463_v0  ;;  %v54_v2 = vmul.f32 %v53_v1, %v53_v1  ;;  %v341_v4 = vld [vmem:[#allocation5 + $0x8] sm:$0xff]   ;;  %v342_v5 = vld [vmem:[#allocation5 + $0x10] sm:$0xff]   ;;  %v343_v6 = vld [vmem:[#allocation5 + $0x18] sm:$0xff]   ;;  %315 = vmatprep.mubr.msk.bf16.mxu0 %vm464_vm0, %v463_v0  ;;  %v465_v12 = vmov 1   ;;  %v466_v13 = vmov 0   ;;  %v467_v14 = vmov 2  }
  0x38   :  { %300 = vmatpush3.bf16.msra.mxu0 %v340_v3  ;;  %v344_v7 = vld [vmem:[#allocation5 + $0x20] sm:$0xff]   ;;  %v345_v8 = vld [vmem:[#allocation5 + $0x28] sm:$0xff]   ;;  %v346_v9 = vld [vmem:[#allocation5 + $0x30] sm:$0xff]   ;;  %335 = vset.pattern.permute.xlu1 %v465_v12  ;;  %v468_v15 = vmov 4   ;;  %v469_v16 = vmov 3   ;;  %v166_v26 = vand.u32 127, %v165_v23 }
  0x39   :  { %55 = vadd.xlane.f32.xlu0 %v54_v2  ;;  %301 = vmatprep.subr.bf16.mxu0 %v463_v0  ;;  %v347_v10 = vld [vmem:[#allocation5 + $0x38] sm:$0xff]   ;;  %v181_v11 = vld [vmem:[#allocation7] sm:$0xff]  ;;  %vm174_vm2 = vcmask 64512   ;;  %v168_v40 = vshrl.u32 %v165_v23, 7  ;;  %vm252_vm8 = vcmask 7168   ;;  %s470_s2 = smov [#allocation8]  }
  0x3a   :  { %334 = vset.pattern.permute.xlu0 %v466_v13  ;;  %195 = vperm.xlu1 %335, %v181_v11   ;;  %s272_s21 = sshll.u32 %s470_s2, 4  ;;  %vm264_vm9 = vcmask 0   ;;  %s273_s21 = int_to_ptr.vmem [resolvable:$true] %s272_s21 }
  0x3b   :  { %vm172_vm7 = vcmp.eq.s32.totalorder %v166_v26, %v168_v40  ;;  %s430_s23 = scalar_lea.vmem %s273_s21, 16  ;;  %s434_s24 = scalar_lea.vmem %s273_s21, 32 }
  0x3c   :  { %302 = vmatpush3.bf16.msra.mxu0 %v341_v4  ;;  %p431_p10 = scmp.ne.s32.totalorder %s273_s21, %s430_s23  ;;  %p435_p11 = scmp.lt.s32.totalorder %s273_s21, %s273_s21 }
  0x3d   :  { %303 = vmatprep.subr.bf16.mxu0 %v463_v0  ;;  %p436_p12 = scmp.lt.s32.totalorder %s434_s24, %s430_s23 }
  0x3e   :  { %336 = vset.pattern.permute.xlu1 %v467_v14 }
  0x3f   :  { %207 = vperm.xlu1 %336, %v181_v11   ;;  %p437_p13 = por %p436_p12, %p435_p11 }
  0x40   :  { %304 = vmatpush3.bf16.msra.mxu0 %v342_v5 }
  0x41   :  { %305 = vmatprep.subr.bf16.mxu0 %v463_v0  ;;  %p438_p0 = pnand %p437_p13, %p431_p10 }
  0x43   :  { %337 = vset.pattern.permute.xlu1 %v469_v16 }
  0x44   :  { %306 = vmatpush3.bf16.msra.mxu0 %v343_v6  ;;  %219 = vperm.xlu1 %337, %v181_v11  }
  0x45   :  { %307 = vmatprep.subr.bf16.mxu0 %v463_v0 }
  0x48   :  { %308 = vmatpush3.bf16.msra.mxu0 %v344_v7  ;;  %338 = vset.pattern.permute.xlu1 %v468_v15 }
  0x49   :  { %309 = vmatprep.subr.bf16.mxu0 %v463_v0  ;;  %231 = vperm.xlu1 %338, %v181_v11  }
  0x4c   :  { %310 = vmatpush3.bf16.msra.mxu0 %v345_v8 }
  0x4d   :  { %311 = vmatprep.subr.bf16.mxu0 %v463_v0 }
  0x4f   :  { %183 = vperm.xlu0 %334, %v181_v11  }
  0x50   :  { %312 = vmatpush3.bf16.msra.mxu0 %v346_v9 }
  0x51   :  { %313 = vmatprep.subr.bf16.mxu0 %v463_v0 }
  0x53   :  { %339 = vset.pattern.permute.xlu0 %v468_v15 }
  0x54   :  { %314 = vmatpush3.bf16.msra.mxu0 %v347_v10 }
  0xb9   :  { %v196_v22 = vpop.permute.xlu1 %195 }
  0xba   :  { %vm197_vm3 = vcmp.eq.s32.totalorder %v166_v26, %v196_v22 }
  0xbe   :  { %v208_v24 = vpop.permute.xlu1 %207 }
  0xbf   :  { %vm209_vm4 = vcmp.eq.s32.totalorder %v166_v26, %v208_v24 }
  0xc3   :  { %v220_v27 = vpop.permute.xlu1 %219 }
  0xc4   :  { %vm221_vm5 = vcmp.eq.s32.totalorder %v166_v26, %v220_v27 }
  0xc6   :  { %v56_v17 = vpop.xlane.xlu0 %55 }
  0xc7   :  { %v57_v18 = vmax.f32 %v56_v17, 1e-24 }
  0xc8   :  { %v232_v37 = vpop.permute.xlu1 %231 }
  0xc9   :  { %348 = vrsqrt.f32 %v57_v18  ;;  %vm233_vm6 = vcmp.eq.s32.totalorder %v166_v26, %v232_v37 }
  0xce   :  { %v184_v25 = vpop.permute.xlu0 %183 }
  0xcf   :  { %vm185_vm1 = vcmp.eq.s32.totalorder %v166_v26, %v184_v25 }
  0xd3   :  { %v349_v19 = vpop.eup %348 }
  0xd4   :  { %v59_v20 = vmul.f32 %v349_v19, %v53_v1 }
  0xd6   :  { %v60_v21 = vpack.c.bf16 %v59_v20, %v59_v20 }
  0xd8   :  { %316 = vmatmul.mubr.bf16.vlgmr.msra.gmra.mrb[0].mxu0 %v60_v21 }
 0x1ab   :  { %v159_v28 = vpop.f32.mrb[0].mxu0 }
 0x1ac   :  { %v317_v29 = vpop.f32.mrb[1].mxu0  ;;  %v198_v30 = vsel %vm197_vm3, %v159_v28, 0.0  ;;  %v186_v31 = vsel %vm185_vm1, %v159_v28, 0.0  ;;  %v210_v36 = vsel %vm209_vm4, %v159_v28, 0.0  ;;  %v222_v39 = vsel %vm221_vm5, %v159_v28, 0.0 }
 0x1ad   :  { %v162_v32 = vpop.f32.mrb[2].mxu0  ;;  %v199_v33 = vsel %vm174_vm2, %v198_v30, 0.0  ;;  %v187_v34 = vsel %vm174_vm2, %v186_v31, 0.0  ;;  %v211_v38 = vsel %vm174_vm2, %v210_v36, 0.0  ;;  %v223_v41 = vsel %vm174_vm2, %v222_v39, 0.0 }
 0x1ae   :  { %200 = vadd.xlane.f32.xlu0 %v199_v33  ;;  %v318_v35 = vpop.f32.mrb[3].mxu0  ;;  %188 = vadd.xlane.f32.xlu1 %v187_v34  ;;  %v234_v42 = vsel %vm233_vm6, %v159_v28, 0.0  ;;  %v173_v44 = vsel %vm172_vm7, %v159_v28, 0.0 }
 0x1af   :  { %v235_v43 = vsel %vm174_vm2, %v234_v42, 0.0  ;;  %v175_v45 = vsel %vm174_vm2, %v173_v44, 0.0 }
 0x1b2   :  { %212 = vadd.xlane.f32.xlu1 %v211_v38 }
 0x1b6   :  { %224 = vadd.xlane.f32.xlu1 %v223_v41 }
 0x1ba   :  { %236 = vadd.xlane.f32.xlu1 %v235_v43 }
 0x1be   :  { %176 = vadd.xlane.f32.xlu1 %v175_v45 }
 0x23b   :  { %v189_v46 = vpop.xlane.xlu1 %188  ;;  %v201_v47 = vpop.xlane.xlu0 %200 }
 0x23c   :  { %v190_v48 = vmul.f32 5.0, %v189_v46  ;;  %v202_v49 = vmul.f32 5.0, %v201_v47 }
 0x23e   :  { %v191_v50 = vmul.f32 1.442695, %v190_v48  ;;  %v203_v52 = vmul.f32 1.442695, %v202_v49 }
 0x23f   :  { %v213_v51 = vpop.xlane.xlu1 %212 }
 0x240   :  { %v214_v53 = vmul.f32 5.0, %v213_v51  ;;  %350 = vpow2.f32 %v191_v50 }
 0x241   :  { %352 = vpow2.f32 %v203_v52 }
 0x242   :  { %v215_v54 = vmul.f32 1.442695, %v214_v53 }
 0x243   :  { %v225_v55 = vpop.xlane.xlu1 %224 }
 0x244   :  { %v226_v56 = vmul.f32 5.0, %v225_v55  ;;  %354 = vpow2.f32 %v215_v54 }
 0x246   :  { %v227_v57 = vmul.f32 1.442695, %v226_v56 }
 0x247   :  { %v237_v58 = vpop.xlane.xlu1 %236 }
 0x248   :  { %356 = vpow2.f32 %v227_v57  ;;  %v238_v59 = vmul.f32 5.0, %v237_v58 }
 0x24a   :  { %v239_v60 = vmul.f32 1.442695, %v238_v59  ;;  %v351_v63 = vpop.eup %350 }
 0x24b   :  { %v177_v61 = vpop.xlane.xlu1 %176  ;;  %v353_v0 = vpop.eup %352 }
 0x24c   :  { %358 = vpow2.f32 %v239_v60  ;;  %v178_v62 = vmul.f32 5.0, %v177_v61  ;;  %v205_v3 = vadd.f32 %v353_v0, %v351_v63 }
 0x24e   :  { %v179_v1 = vmul.f32 1.442695, %v178_v62  ;;  %v355_v2 = vpop.eup %354 }
 0x24f   :  { %v217_v5 = vadd.f32 %v355_v2, %v205_v3 }
 0x250   :  { %360 = vpow2.f32 %v179_v1 }
 0x252   :  { %v357_v4 = vpop.eup %356 }
 0x253   :  { %v229_v6 = vadd.f32 %v357_v4, %v217_v5 }
 0x256   :  { %v359_v7 = vpop.eup %358 }
 0x257   :  { %v241_v8 = vadd.f32 %v359_v7, %v229_v6 }
 0x259   :  { %v242_v9 = vmul.f32 0.2, %v241_v8 }
 0x25a   :  { %v361_v10 = vpop.eup %360 }
 0x25b   :  { %v243_v11 = vadd.f32 %v361_v10, %v242_v9 }
 0x25d   :  { %v244_v12 = vadd.f32 1e-06, %v243_v11 }
 0x25f   :  { %362 = vlog2.f32 %v244_v12 }
 0x269   :  { %v363_v13 = vpop.eup %362 }
 0x26a   :  { %v246_v14 = vmul.f32 0.6931472, %v363_v13 }
 0x26c   :  { %v247_v15 = vsub.f32 %v246_v14, %v178_v62 }
 0x26e   :  { %v253_v16 = vsel %vm252_vm8, %v247_v15, 0.0 }
 0x26f   :  { %254 = vadd.xlane.f32.xlu1 %v253_v16 }
 0x2fc   :  { %v255_v17 = vpop.xlane.xlu1 %254 }
 0x2fd   :  { %v256_v18 = vrot.slane %v255_v17, 4 }
 0x2ff   :  { %v257_v19 = vadd.f32 %v256_v18, %v255_v17 }
 0x301   :  { %v258_v20 = vrot.slane %v257_v19, 2 }
 0x303   :  { %v259_v21 = vadd.f32 %v258_v20, %v257_v19 }
 0x305   :  { %v260_v22 = vrot.slane %v259_v21, 1 }
 0x307   :  { %v261_v23 = vadd.f32 %v260_v22, %v259_v21 }
 0x309   :  { %319 = vpush %v261_v23 }
 0x33a   :  { %s320_s22 = spop %319 }
 0x33b   :  { %v263_v24 = vstv %s320_s22 }
 0x33c   :  { %265 = vst.msk [vmem:[#allocation8] sm:$0x1] %vm264_vm9, %v263_v24 }
 0x33d   :  { %441 = shalt.err (!%p438_p0)
}
 0x33e   :  { %s442_s27 = scalar_lea.hbm %s548_s3, 16 }
 0x33f   :  { %p443_p1 = scmp.ne.s32.totalorder %s548_s3, %s442_s27  ;;  %p446_p2 = scmp.lt.u32.totalorder %s442_s27, %s548_s3 }
 0x341   :  { %p448_p3 = pnand %p446_p2, %p443_p1 }
 0x343   :  { %451 = shalt.err (!%p448_p3)
}
 0x344   :  { %275 = dma.vmem_to_hbm [thread:$0]  %s273_s21, 16, %s548_s3, [#allocation4]  }
 0x345   :  { %456 = dma.done.wait [#allocation4], 16  }
 0x346   :  { %457 = vsyncadd [#allocation4], 4294967280 }
 0x347   :  { %279 = vsyncpa [#allocation3], 1 }
 0x348   :  { %280 = vsyncpa [#allocation6], 1 }
 0x349   :  { %281 = vsyncpa [#allocation4], 1 }

</bundles_post_ra>
